<compile_context>
chip_gen: v7x
topology: tpu7x:2x2x1
jax: 0.10.0
libtpu: 0.0.40
codegen_flags: <defaults>
</compile_context>

<pallas_src>
import jax
import jax.numpy as jnp
from jax.experimental import pallas as pl
from jax.experimental.pallas import tpu as pltpu


def _round_up(x, m):
    return ((x + m - 1) // m) * m


# ~20 MiB tile budget: headroom under the 32 MiB scoped-VMEM default and well
# inside v7x's 64 MiB physical VMEM (v5e/v6e have 128 MiB, so this is safe
# everywhere).
_VMEM_TILE_BUDGET = 20 << 20


def _choose_tn(N):
    # Never pad N just for the kernel: a full-extent last dim is exempt from
    # the 128-lane divisibility rule, and a masked vst on a tiny output is
    # negligible.  Only tile N when it is large and already 128/256-aligned.
    if N >= 512 and N % 256 == 0:
        return 256
    if N >= 256 and N % 128 == 0:
        return 128
    return N


def _choose_tk(K, tn, tm_bound):
    def footprint(tk):
        # double-buffered bf16 x & W tiles + resident f32 output tile
        return 2 * (tm_bound * tk + tk * tn) * 2 + tm_bound * tn * 4

    if footprint(K) <= _VMEM_TILE_BUDGET:
        return K  # single K step: grid K axis collapses, no accumulator loop
    tk = 4096
    while tk > 256 and footprint(tk) > _VMEM_TILE_BUDGET:
        tk //= 2
    return tk


def _linear_bias_kernel(x_ref, w_ref, b_ref, o_ref):
    # Single K step: one MXU matmul (bf16 in, f32 accumulate) + bias.
    o_ref[...] = (
        jnp.dot(x_ref[...], w_ref[...], preferred_element_type=jnp.float32)
        + b_ref[...]
    )


def _linear_bias_acc_kernel(x_ref, w_ref, b_ref, o_ref):
    # K is the trailing "arbitrary" grid axis; the f32 output block's index is
    # constant in k, so it stays resident in VMEM and is used as the
    # accumulator directly (no scratch buffer, no final copy).
    k = pl.program_id(2)

    @pl.when(k == 0)
    def _():
        o_ref[...] = jnp.zeros_like(o_ref)

    o_ref[...] += jnp.dot(x_ref[...], w_ref[...],
                          preferred_element_type=jnp.float32)

    @pl.when(k == pl.num_programs(2) - 1)
    def _():
        o_ref[...] += b_ref[...]


def prepare_linear_head(w, b, *, max_tm=256):
    """One-time parameter preprocessing (hoisted out of the forward path).

    Folds the ZeroOneOneOne normalization into the linear head
        ((x - 0.5) / 0.5) @ W + b  ==  x @ (2 W) + (b - sum_k W[k, :]),
    picks the K/N tiling, pads K only if it must be tiled, and casts W to
    bfloat16 -- all exactly once.
    """
    K, N = w.shape
    w_folded = (2.0 * w).astype(jnp.float32)                       # exact in f32
    b_folded = (jnp.reshape(b, (1, N))
                - jnp.sum(w, axis=0, keepdims=True)).astype(jnp.float32)

    tn = _choose_tn(N)
    tk = _choose_tk(K, tn, max_tm)
    Kp = _round_up(K, tk)

    if Kp != K:
        # Zero rows contribute nothing to the contraction.
        w_folded = jnp.zeros((Kp, N), jnp.float32).at[:K, :].set(w_folded)

    return dict(
        w_bf16=w_folded.astype(jnp.bfloat16),   # (Kp, N)
        bias=b_folded,                          # (1, N) f32
        K=K, Kp=Kp, N=N, tk=tk, tn=tn,
    )


def zero_one_one_one_network(x_nchw, params):
    """ZeroOneOneOneNetwork.forward with a linear classifier head.

    Computes model((x - 0.5) / 0.5) where model(z) = z.reshape(B, -1) @ W + b,
    with the normalization pre-folded into `params` by prepare_linear_head.
    """
    B = x_nchw.shape[0]
    K, Kp, N = params["K"], params["Kp"], params["N"]
    tk, tn = params["tk"], params["tn"]
    w_bf, bias = params["w_bf16"], params["bias"]

    x_flat = x_nchw.reshape(B, K)
    if Kp != K:
        x_flat = jnp.pad(x_flat, ((0, 0), (0, Kp - K)))   # tiny vs. W
    x_bf = x_flat.astype(jnp.bfloat16)

    # Full-extent M block: exempt from the sublane divisibility rule, so the
    # batch is never padded.  (For very large batches one would tile M too so
    # the "parallel" axes have >=2 blocks for v7x's second TensorCore.)
    tm = B
    grid = (1, N // tn, Kp // tk)
    nk = grid[2]

    kernel = _linear_bias_kernel if nk == 1 else _linear_bias_acc_kernel

    cost = pl.CostEstimate(
        flops=2 * B * Kp * N,
        transcendentals=0,
        bytes_accessed=B * Kp * 2 + Kp * N * 2 + N * 4 + B * N * 4,
    )

    out = pl.pallas_call(
        kernel,
        out_shape=jax.ShapeDtypeStruct((B, N), jnp.float32),
        grid=grid,
        in_specs=[
            pl.BlockSpec((tm, tk), lambda i, j, k: (i, k)),
            pl.BlockSpec((tk, tn), lambda i, j, k: (k, j)),
            pl.BlockSpec((1, tn), lambda i, j, k: (0, j)),
        ],
        out_specs=pl.BlockSpec((tm, tn), lambda i, j, k: (i, j)),
        compiler_params=pltpu.CompilerParams(
            dimension_semantics=("parallel", "parallel", "arbitrary"),
            vmem_limit_bytes=32 << 20,
        ),
        cost_estimate=cost,
    )(x_bf, w_bf, bias)

    return out


if __name__ == "__main__":
    key = jax.random.PRNGKey(0)
    kx, kw, kb = jax.random.split(key, 3)

    # Small shapes: batch=2, channels=4, spatial=16x16, out features=32.
    B, C, H, W = 2, 4, 16, 16
    K = C * H * W
    N = 32

    x = jax.random.uniform(kx, (B, C, H, W), dtype=jnp.float32)    # in [0,1]
    w = jax.random.normal(kw, (K, N), dtype=jnp.float32) * 0.02    # head params
    b = jax.random.normal(kb, (1, N), dtype=jnp.float32) * 0.02

    # One-time weight preparation (outside the forward path).
    params = prepare_linear_head(w, b)

    out = zero_one_one_one_network(x, params)
    out = jax.block_until_ready(out)

    # Pure-JAX f32 reference of the original forward semantics.
    ref = ((x.reshape(B, K) - 0.5) / 0.5) @ w + b
    assert out.shape == (B, N)
    # bf16 MXU inputs (f32 accumulate) -> loosened tolerance vs f32 reference.
    assert jnp.allclose(out, ref, atol=5e-2, rtol=5e-2), (
        float(jnp.max(jnp.abs(out - ref))))

    print("KERNEL_OK")
</pallas_src>

<mosaic_0001>
module attributes {stable_mosaic.version = 11 : i64} {
  func.func @_linear_bias_kernel(%arg0: i32, %arg1: i32, %arg2: i32, %arg3: memref<2x1024xbf16, #tpu.memory_space<vmem>>, %arg4: memref<1024x32xbf16, #tpu.memory_space<vmem>>, %arg5: memref<1x32xf32, #tpu.memory_space<vmem>>, %arg6: memref<2x32xf32, #tpu.memory_space<vmem>>) attributes {dimension_semantics = [#tpu.dimension_semantics<parallel>, #tpu.dimension_semantics<parallel>, #tpu.dimension_semantics<arbitrary>], iteration_bounds = array<i64: 1, 1, 1>, scalar_prefetch = 0 : i64, scratch_operands = 0 : i64, tpu.core_type = #tpu.core_type<tc>, window_params = [{transform_indices = @transform_0, window_bounds = array<i64: 2, 1024>}, {transform_indices = @transform_1, window_bounds = array<i64: 1024, 32>}, {transform_indices = @transform_2, window_bounds = array<i64: 1, 32>}, {transform_indices = @transform_3, window_bounds = array<i64: 2, 32>}]} {
    %c0 = arith.constant 0 : index
    %c0_0 = arith.constant 0 : index
    %0 = vector.load %arg3[%c0, %c0_0] : memref<2x1024xbf16, #tpu.memory_space<vmem>>, vector<2x1024xbf16>
    %c0_1 = arith.constant 0 : index
    %c0_2 = arith.constant 0 : index
    %1 = vector.load %arg4[%c0_1, %c0_2] : memref<1024x32xbf16, #tpu.memory_space<vmem>>, vector<1024x32xbf16>
    %cst = arith.constant dense<0.000000e+00> : vector<2x32xf32>
    %2 = tpu.matmul %0, %1, %cst {dimension_numbers = #tpu.dot_dimension_numbers<[1], [0], [0], [1], [0, 0, 1, 1], [], []>} : vector<2x1024xbf16>, vector<1024x32xbf16>, vector<2x32xf32> -> vector<2x32xf32>
    %c0_3 = arith.constant 0 : index
    %c0_4 = arith.constant 0 : index
    %3 = vector.load %arg5[%c0_3, %c0_4] : memref<1x32xf32, #tpu.memory_space<vmem>>, vector<1x32xf32>
    %4 = vector.broadcast %3 : vector<1x32xf32> to vector<2x32xf32>
    %5 = arith.addf %2, %4 : vector<2x32xf32>
    %c0_5 = arith.constant 0 : index
    %c0_6 = arith.constant 0 : index
    %6 = vector.load %arg6[%c0_5, %c0_6] : memref<2x32xf32, #tpu.memory_space<vmem>>, vector<2x32xf32>
    tpu.vector_store %arg6[%c0_5, %c0_6], %5 {strides = array<i32>} : memref<2x32xf32, #tpu.memory_space<vmem>>, vector<2x32xf32>,
    return
  }
  func.func @transform_0(%arg0: i32, %arg1: i32, %arg2: i32) -> (i32, i32) {
    %c0_i32 = arith.constant 0 : i32
    return %arg0, %arg2 : i32, i32
  }
  func.func @transform_1(%arg0: i32, %arg1: i32, %arg2: i32) -> (i32, i32) {
    %c0_i32 = arith.constant 0 : i32
    return %arg2, %arg1 : i32, i32
  }
  func.func @transform_2(%arg0: i32, %arg1: i32, %arg2: i32) -> (i32, i32) {
    %c0_i32 = arith.constant 0 : i32
    %c0_i32_0 = arith.constant 0 : i32
    return %c0_i32, %arg1 : i32, i32
  }
  func.func @transform_3(%arg0: i32, %arg1: i32, %arg2: i32) -> (i32, i32) {
    %c0_i32 = arith.constant 0 : i32
    return %arg0, %arg1 : i32, i32
  }
}

</mosaic_0001>

<bundles_post_ra>
// kernel: tpu_custom_call.1
= control target key start
LH: loop header
LB: loop body
LE: loop exit
PB: predicated region body
PF: predicated region fallthrough
CT: control target
= control target key end

     0   :  { %v157_v28 = vlaneseq  ;;  %v1014_v36 = vmov 1966171168   ;;  %s1259_s0 = inlined_call_operand.vmem [shape: bf16[2,1024], index: 0, kind: input, shape index: {}]   ;;  %s1260_s1 = inlined_call_operand.vmem [shape: bf16[1024,32], index: 1, kind: input, shape index: {}]   ;;  %s1261_s2 = inlined_call_operand.vmem [shape: f32[1,32], index: 2, kind: input, shape index: {}]   ;;  %s1262_s3 = inlined_call_operand.hbm [shape: f32[2,32], index: 3, kind: output, shape index: {}]  }
   0x1   :  { %v925_v0 = vld [vmem:[%s1260_s1 + $0x40] sm:$0xff]   ;;  %v929_v4 = vld [vmem:[%s1260_s1 + $0x48] sm:$0xff]   ;;  %v933_v8 = vld [vmem:[%s1260_s1 + $0x50] sm:$0xff]   ;;  %v155_v37 = vunpack.c.l.s4 %v1014_v36 }
   0x2   :  { %v926_v1 = vld [vmem:[%s1260_s1 + $0xc0] sm:$0xff]   ;;  %835 = vmatprep.subr.bf16.mxu0 %v925_v0  ;;  %v930_v5 = vld [vmem:[%s1260_s1 + $0xc8] sm:$0xff]   ;;  %v934_v9 = vld [vmem:[%s1260_s1 + $0xd0] sm:$0xff]   ;;  %v158_v33 = vshrl.u32 %v157_v28, 7 }
   0x3   :  { %v927_v2 = vld [vmem:[%s1260_s1] sm:$0xff]   ;;  %857 = vmatprep.subr.bf16.mxu1 %v926_v1  ;;  %v931_v6 = vld [vmem:[%s1260_s1 + $0x8] sm:$0xff]   ;;  %v935_v10 = vld [vmem:[%s1260_s1 + $0x10] sm:$0xff]   ;;  %v156_v40 = vunpack.c.0.s8 %v155_v37 }
   0x4   :  { %v928_v3 = vld [vmem:[%s1260_s1 + $0x80] sm:$0xff]   ;;  %836 = vmatpush3.bf16.msra.mxu0 %v927_v2  ;;  %v932_v7 = vld [vmem:[%s1260_s1 + $0x88] sm:$0xff]   ;;  %v936_v11 = vld [vmem:[%s1260_s1 + $0x90] sm:$0xff]  }
   0x5   :  { %858 = vmatpush3.bf16.msra.mxu1 %v928_v3  ;;  %837 = vmatprep.subr.bf16.mxu0 %v929_v4  ;;  %v937_v12 = vld [vmem:[%s1260_s1 + $0x58] sm:$0xff]   ;;  %v941_v16 = vld [vmem:[%s1260_s1 + $0x60] sm:$0xff]   ;;  %v945_v20 = vld [vmem:[%s1260_s1 + $0x68] sm:$0xff]   ;;  %v1141_v41 = vsub.s32 %v156_v40, %v158_v33 }
   0x6   :  { %859 = vmatprep.subr.bf16.mxu1 %v930_v5  ;;  %v938_v13 = vld [vmem:[%s1260_s1 + $0xd8] sm:$0xff]   ;;  %v942_v17 = vld [vmem:[%s1260_s1 + $0xe0] sm:$0xff]   ;;  %v946_v21 = vld [vmem:[%s1260_s1 + $0xe8] sm:$0xff]  }
   0x7   :  { %v939_v14 = vld [vmem:[%s1260_s1 + $0x18] sm:$0xff]   ;;  %v943_v18 = vld [vmem:[%s1260_s1 + $0x20] sm:$0xff]   ;;  %v947_v22 = vld [vmem:[%s1260_s1 + $0x28] sm:$0xff]  }
   0x8   :  { %838 = vmatpush3.bf16.msra.mxu0 %v931_v6  ;;  %v940_v15 = vld [vmem:[%s1260_s1 + $0x98] sm:$0xff]   ;;  %v944_v19 = vld [vmem:[%s1260_s1 + $0xa0] sm:$0xff]   ;;  %v948_v23 = vld [vmem:[%s1260_s1 + $0xa8] sm:$0xff]  }
   0x9   :  { %860 = vmatpush3.bf16.msra.mxu1 %v932_v7  ;;  %839 = vmatprep.subr.bf16.mxu0 %v933_v8  ;;  %v949_v24 = vld [vmem:[%s1260_s1 + $0x70] sm:$0xff]   ;;  %v953_v29 = vld [vmem:[%s1260_s1 + $0x78] sm:$0xff]   ;;  %v16_v34 = vld [vmem:[%s1259_s0] sm:$0xff] }
   0xa   :  { %861 = vmatprep.subr.bf16.mxu1 %v934_v9  ;;  %v950_v25 = vld [vmem:[%s1260_s1 + $0xf0] sm:$0xff]   ;;  %v954_v30 = vld [vmem:[%s1260_s1 + $0xf8] sm:$0xff]   ;;  %v958_v35 = vld [vmem:[%s1260_s1 + $0x140] sm:$0xff]   ;;  %v153_v39 = vcombine.high %v16_v34, %v16_v34  ;;  %v160_v42 = vrot.slane %v16_v34, %v1141_v41 }
   0xb   :  { %v951_v26 = vld [vmem:[%s1260_s1 + $0x30] sm:$0xff]   ;;  %v955_v31 = vld [vmem:[%s1260_s1 + $0x38] sm:$0xff]   ;;  %v959_v38 = vld [vmem:[%s1260_s1 + $0x1c0] sm:$0xff]  }
   0xc   :  { %840 = vmatpush3.bf16.msra.mxu0 %v935_v10  ;;  %v952_v27 = vld [vmem:[%s1260_s1 + $0xb0] sm:$0xff]   ;;  %v956_v32 = vld [vmem:[%s1260_s1 + $0xb8] sm:$0xff]   ;;  %v1145_v43 = vrot.slane %v153_v39, %v1141_v41  ;;  %v168_v44 = vcombine.high %v160_v42, %v160_v42  ;;  %v176_v45 = vrot.slane %v160_v42, %v1141_v41  ;;  %v960_v48 = vld [vmem:[%s1260_s1 + $0x100] sm:$0xff]  }
   0xd   :  { %862 = vmatpush3.bf16.msra.mxu1 %v936_v11  ;;  %841 = vmatprep.subr.bf16.mxu0 %v937_v12  ;;  %v962_v51 = vld [vmem:[%s1260_s1 + $0x148] sm:$0xff]   ;;  %v961_v53 = vld [vmem:[%s1260_s1 + $0x180] sm:$0xff]   ;;  %v966_v57 = vld [vmem:[%s1260_s1 + $0x150] sm:$0xff]  }
   0xe   :  { %863 = vmatprep.subr.bf16.mxu1 %v938_v13  ;;  %v169_v46 = vcombine.high %v1145_v43, %v1145_v43  ;;  %v190_v47 = vrot.slane %v168_v44, %v1141_v41  ;;  %v198_v50 = vcombine.high %v176_v45, %v176_v45  ;;  %v963_v54 = vld [vmem:[%s1260_s1 + $0x1c8] sm:$0xff]   ;;  %v967_v59 = vld [vmem:[%s1260_s1 + $0x1d0] sm:$0xff]   ;;  %v970_v61 = vld [vmem:[%s1260_s1 + $0x158] sm:$0xff]  }
   0xf   :  { %v964_v56 = vld [vmem:[%s1260_s1 + $0x108] sm:$0xff]   ;;  %v968_v60 = vld [vmem:[%s1260_s1 + $0x110] sm:$0xff]   ;;  %v971_v63 = vld [vmem:[%s1260_s1 + $0x1d8] sm:$0xff]  }
  0x10   :  { %842 = vmatpush3.bf16.msra.mxu0 %v939_v14  ;;  %v197_v49 = vrot.slane %v169_v46, %v1141_v41  ;;  %626 = vmatprep.mubr.bf16.mxu0 %v190_v47  ;;  %v200_v52 = vcombine.high %v190_v47, %v190_v47  ;;  %v965_v58 = vld [vmem:[%s1260_s1 + $0x188] sm:$0xff]   ;;  %v969_v62 = vld [vmem:[%s1260_s1 + $0x190] sm:$0xff]   ;;  %v972_v0 = vld [vmem:[%s1260_s1 + $0x118] sm:$0xff]  }
  0x11   :  { %864 = vmatpush3.bf16.msra.mxu1 %v940_v15  ;;  %843 = vmatprep.subr.bf16.mxu0 %v941_v16  ;;  %v974_v1 = vld [vmem:[%s1260_s1 + $0x160] sm:$0xff]   ;;  %v973_v2 = vld [vmem:[%s1260_s1 + $0x198] sm:$0xff]   ;;  %v978_v5 = vld [vmem:[%s1260_s1 + $0x168] sm:$0xff]  }
  0x12   :  { %865 = vmatprep.subr.bf16.mxu1 %v942_v17  ;;  %v201_v55 = vcombine.high %v197_v49, %v197_v49  ;;  %666 = vmatprep.mubr.bf16.mxu1 %v200_v52  ;;  %v975_v3 = vld [vmem:[%s1260_s1 + $0x1e0] sm:$0xff]   ;;  %v979_v7 = vld [vmem:[%s1260_s1 + $0x1e8] sm:$0xff]   ;;  %v982_v9 = vld [vmem:[%s1260_s1 + $0x170] sm:$0xff]  }
  0x13   :  { %v976_v4 = vld [vmem:[%s1260_s1 + $0x120] sm:$0xff]   ;;  %v980_v8 = vld [vmem:[%s1260_s1 + $0x128] sm:$0xff]  }
  0x14   :  { %844 = vmatpush3.bf16.msra.mxu0 %v943_v18  ;;  %v977_v6 = vld [vmem:[%s1260_s1 + $0x1a0] sm:$0xff]  }
  0x15   :  { %866 = vmatpush3.bf16.msra.mxu1 %v944_v19  ;;  %845 = vmatprep.subr.bf16.mxu0 %v945_v20 }
  0x16   :  { %867 = vmatprep.subr.bf16.mxu1 %v946_v21 }
  0x18   :  { %846 = vmatpush3.bf16.msra.mxu0 %v947_v22 }
  0x19   :  { %868 = vmatpush3.bf16.msra.mxu1 %v948_v23  ;;  %847 = vmatprep.subr.bf16.mxu0 %v949_v24 }
  0x1a   :  { %869 = vmatprep.subr.bf16.mxu1 %v950_v25 }
  0x1c   :  { %848 = vmatpush3.bf16.msra.mxu0 %v951_v26 }
  0x1d   :  { %870 = vmatpush3.bf16.msra.mxu1 %v952_v27  ;;  %849 = vmatprep.subr.bf16.mxu0 %v953_v29 }
  0x1e   :  { %871 = vmatprep.subr.bf16.mxu1 %v954_v30 }
  0x20   :  { %850 = vmatpush3.bf16.msra.mxu0 %v955_v31 }
  0x21   :  { %872 = vmatpush3.bf16.msra.mxu1 %v956_v32  ;;  %879 = vmatprep.subr.bf16.mxu0 %v958_v35 }
  0x22   :  { %901 = vmatprep.subr.bf16.mxu1 %v959_v38 }
  0x23   :  { %627 = vmatmul.mubr.bf16.vlgmr.msra.gmra.mrb[0].mxu0 %v176_v45 }
  0x24   :  { %880 = vmatpush3.bf16.msra.mxu0 %v960_v48  ;;  %667 = vmatmul.mubr.bf16.vlgmr.msra.gmra.mrb[0].mxu1 %v198_v50 }
  0x25   :  { %881 = vmatprep.subr.bf16.mxu0 %v962_v51  ;;  %902 = vmatpush3.bf16.msra.mxu1 %v961_v53 }
  0x26   :  { %706 = vmatprep.mubr.bf16.mxu0 %v197_v49  ;;  %903 = vmatprep.subr.bf16.mxu1 %v963_v54 }
  0x27   :  { %746 = vmatprep.mubr.bf16.mxu1 %v201_v55 }
  0x28   :  { %882 = vmatpush3.bf16.msra.mxu0 %v964_v56 }
  0x29   :  { %883 = vmatprep.subr.bf16.mxu0 %v966_v57  ;;  %904 = vmatpush3.bf16.msra.mxu1 %v965_v58 }
  0x2a   :  { %905 = vmatprep.subr.bf16.mxu1 %v967_v59 }
  0x2c   :  { %884 = vmatpush3.bf16.msra.mxu0 %v968_v60 }
  0x2d   :  { %885 = vmatprep.subr.bf16.mxu0 %v970_v61  ;;  %906 = vmatpush3.bf16.msra.mxu1 %v969_v62 }
  0x2e   :  { %907 = vmatprep.subr.bf16.mxu1 %v971_v63 }
  0x30   :  { %886 = vmatpush3.bf16.msra.mxu0 %v972_v0 }
  0x31   :  { %887 = vmatprep.subr.bf16.mxu0 %v974_v1  ;;  %908 = vmatpush3.bf16.msra.mxu1 %v973_v2 }
  0x32   :  { %909 = vmatprep.subr.bf16.mxu1 %v975_v3 }
  0x34   :  { %888 = vmatpush3.bf16.msra.mxu0 %v976_v4 }
  0x35   :  { %889 = vmatprep.subr.bf16.mxu0 %v978_v5 }
  0x36   :  { %8 = vsyncpa [#allocation3], 0  ;;  %910 = vmatpush3.bf16.msra.mxu1 %v977_v6  ;;  %v981_v10 = vld [vmem:[%s1260_s1 + $0x1a8] sm:$0xff]   ;;  %v983_v11 = vld [vmem:[%s1260_s1 + $0x1f0] sm:$0xff]   ;;  %v183_v17 = vrot.slane %v1145_v43, %v1141_v41  ;;  %vm754_vm0 = vcmask 254976  }
  0x37   :  { %911 = vmatprep.subr.bf16.mxu1 %v979_v7  ;;  %v984_v12 = vld [vmem:[%s1260_s1 + $0x130] sm:$0xff]   ;;  %v986_v13 = vld [vmem:[%s1260_s1 + $0x178] sm:$0xff]   ;;  %v770_v21 = vld [vmem:[%s1261_s2] ss:$0 sm:$0xff] }
  0x38   :  { %890 = vmatpush3.bf16.msra.mxu0 %v980_v8  ;;  %v985_v14 = vld [vmem:[%s1260_s1 + $0x1b0] sm:$0xff]   ;;  %v987_v15 = vld [vmem:[%s1260_s1 + $0x1f8] sm:$0xff]   ;;  %v199_v19 = vcombine.high %v183_v17, %v183_v17 }
  0x39   :  { %891 = vmatprep.subr.bf16.mxu0 %v982_v9  ;;  %v988_v16 = vld [vmem:[%s1260_s1 + $0x138] sm:$0xff]  }
  0x3a   :  { %912 = vmatpush3.bf16.msra.mxu1 %v981_v10  ;;  %v989_v18 = vld [vmem:[%s1260_s1 + $0x1b8] sm:$0xff]   ;;  %s1015_s1 = smov [#allocation2]  }
  0x3b   :  { %913 = vmatprep.subr.bf16.mxu1 %v983_v11  ;;  %s762_s2 = sshll.u32 %s1015_s1, 4  ;;  %s763_s2 = int_to_ptr.vmem [resolvable:$true] %s762_s2 }
  0x3c   :  { %892 = vmatpush3.bf16.msra.mxu0 %v984_v12  ;;  %s990_s6 = scalar_lea.vmem %s763_s2, 32  ;;  %p995_p1 = scmp.lt.s32.totalorder %s763_s2, %s763_s2 }
  0x3d   :  { %893 = vmatprep.subr.bf16.mxu0 %v986_v13  ;;  %p991_p0 = scmp.ne.s32.totalorder %s763_s2, %s990_s6  ;;  %p996_p2 = scmp.lt.s32.totalorder %s990_s6, %s990_s6 }
  0x3e   :  { %914 = vmatpush3.bf16.msra.mxu1 %v985_v14 }
  0x3f   :  { %915 = vmatprep.subr.bf16.mxu1 %v987_v15  ;;  %p997_p3 = por %p996_p2, %p995_p1 }
  0x40   :  { %894 = vmatpush3.bf16.msra.mxu0 %v988_v16 }
  0x41   :  { %p998_p4 = pnand %p997_p3, %p991_p0 }
  0x42   :  { %916 = vmatpush3.bf16.msra.mxu1 %v989_v18 }
  0x43   :  { %707 = vmatmul.mubr.bf16.vlgmr.msra.gmra.mrb[4].mxu0 %v183_v17 }
  0x45   :  { %747 = vmatmul.mubr.bf16.vlgmr.msra.gmra.mrb[4].mxu1 %v199_v19 }
  0xf6   :  { %v851_v20 = vpop.f32.mrb[0].mxu0 }
  0xf7   :  { %v852_v22 = vpop.f32.mrb[1].mxu0  ;;  %v873_v23 = vpop.f32.mrb[0].mxu1 }
  0xf8   :  { %v853_v24 = vadd.f32 %v852_v22, %v851_v20  ;;  %v854_v25 = vpop.f32.mrb[2].mxu0  ;;  %v874_v26 = vpop.f32.mrb[1].mxu1 }
  0xf9   :  { %v855_v27 = vpop.f32.mrb[3].mxu0  ;;  %v875_v29 = vadd.f32 %v874_v26, %v873_v23  ;;  %v876_v30 = vpop.f32.mrb[2].mxu1 }
  0xfa   :  { %v629_v28 = vadd.f32 %v853_v24, %v770_v21  ;;  %v877_v31 = vpop.f32.mrb[3].mxu1 }
  0xfc   :  { %v669_v32 = vadd.f32 %v875_v29, %v629_v28 }
 0x116   :  { %v895_v33 = vpop.f32.mrb[4].mxu0 }
 0x117   :  { %v896_v34 = vpop.f32.mrb[5].mxu0 }
 0x118   :  { %v917_v35 = vpop.f32.mrb[4].mxu1  ;;  %v897_v36 = vadd.f32 %v896_v34, %v895_v33  ;;  %v898_v37 = vpop.f32.mrb[6].mxu0 }
 0x119   :  { %v918_v38 = vpop.f32.mrb[5].mxu1  ;;  %v899_v39 = vpop.f32.mrb[7].mxu0 }
 0x11a   :  { %v709_v40 = vadd.f32 %v897_v36, %v669_v32  ;;  %v919_v41 = vadd.f32 %v918_v38, %v917_v35  ;;  %v920_v42 = vpop.f32.mrb[6].mxu1 }
 0x11b   :  { %v921_v43 = vpop.f32.mrb[7].mxu1 }
 0x11c   :  { %v749_v44 = vadd.f32 %v919_v41, %v709_v40 }
 0x11e   :  { %755 = vst.msk [vmem:[#allocation2] sm:$0x3] %vm754_vm0, %v749_v44 }
 0x11f   :  { %1001 = shalt.err (!%p998_p4)
}
 0x120   :  { %s1002_s9 = scalar_lea.hbm %s1262_s3, 32 }
 0x121   :  { %p1003_p5 = scmp.ne.s32.totalorder %s1262_s3, %s1002_s9  ;;  %p1006_p6 = scmp.lt.u32.totalorder %s1002_s9, %s1262_s3 }
 0x123   :  { %p1008_p7 = pnand %p1006_p6, %p1003_p5 }
 0x125   :  { %1011 = shalt.err (!%p1008_p7)
}
 0x126   :  { %765 = dma.vmem_to_hbm [thread:$0]  %s763_s2, 32, %s1262_s3, [#allocation3]  }
 0x127   :  { %1012 = dma.done.wait [#allocation3], 32  }
 0x128   :  { %1013 = vsyncadd [#allocation3], 4294967264 }
 0x129   :  { %769 = vsyncpa [#allocation3], 1 }

</bundles_post_ra>
